<compile_context>
chip_gen: v7x
topology: tpu7x:2x2x1
jax: 0.10.0
libtpu: 0.0.40
codegen_flags: <defaults>
</compile_context>

<pallas_src>
import jax
import jax.numpy as jnp
from jax.experimental import pallas as pl
from jax.experimental.pallas import tpu as pltpu

HIDDEN = 128      # fc1 output width (matches nn.Linear(state_dim, 128))
OUT_PAD = 128     # lane-dense padded fc2 output width
NEG_BIG = -1e30   # padded-logit bias (exp(NEG_BIG - m) == 0 exactly)


def _cdiv(a, b):
    return -(-a // b)


def _round_up(n, m):
    return ((n + m - 1) // m) * m


def policy_kernel(x_ref, w1_ref, b1_ref, w2_ref, b2_ref, out_ref):
    # fc1 + relu. x arrives as f32 straight from HBM (read exactly once) and is
    # cast to bf16 on the VPU right before the MXU matmul; accumulate in f32.
    x_bf = x_ref[...].astype(jnp.bfloat16)
    h = jnp.dot(x_bf, w1_ref[...], preferred_element_type=jnp.float32)
    h = jnp.maximum(h + b1_ref[...], 0.0)

    # fc2 logits (bf16 MXU inputs, f32 accumulate). Output is lane-dense (128
    # columns); padded W2 columns are zero and the matching b2 entries are
    # NEG_BIG, so the column mask is baked into the bias (no iota/where here).
    logits = jnp.dot(h.astype(jnp.bfloat16), w2_ref[...],
                     preferred_element_type=jnp.float32)
    logits = logits + b2_ref[...]

    # Numerically stable softmax over the padded 128-lane action axis.
    # Exact f32 division so every row sums to 1 to f32 precision.
    m = jnp.max(logits, axis=-1, keepdims=True)
    e = jnp.exp(logits - m)
    denom = jnp.sum(e, axis=-1, keepdims=True)
    out_ref[...] = (e / denom).astype(out_ref.dtype)


def prepare_params(w1, b1, w2, b2):
    """One-time weight prep (hoisted out of the per-call hot path).

    w1: [state_dim, 128], b1: [1, 128] or [128], w2: [128, action_dim],
    b2: [1, action_dim] or [action_dim].
    """
    state_dim, hidden = w1.shape
    assert hidden == HIDDEN
    action_dim = w2.shape[1]
    assert action_dim <= OUT_PAD

    w1_bf = w1.astype(jnp.bfloat16)
    b1_f32 = b1.astype(jnp.float32).reshape(1, HIDDEN)
    # Zero-pad W2 columns to the lane-dense width; bake the softmax column mask
    # into b2 by padding it with NEG_BIG (padded logits == NEG_BIG -> exp == 0).
    w2_bf = jnp.pad(w2, ((0, 0), (0, OUT_PAD - action_dim))).astype(jnp.bfloat16)
    b2_f32 = jnp.pad(b2.astype(jnp.float32).reshape(1, action_dim),
                     ((0, 0), (0, OUT_PAD - action_dim)),
                     constant_values=NEG_BIG)
    return (w1_bf, b1_f32, w2_bf, b2_f32, action_dim)


def _choose_tile_b(batch, max_tile_b):
    if batch <= 8:
        return batch  # full-extent block (no divisibility constraint)
    # Aim for >= 2 grid steps so ("parallel",) can use both v7x TensorCores.
    half = _round_up(_cdiv(batch, 2), 8)
    return min(max_tile_b, half)


def policy_forward(x, params, *, max_tile_b=1024, out_dtype=jnp.float32):
    """x: [B, state_dim] f32; returns softmax probs [B, action_dim]."""
    w1_bf, b1_f32, w2_bf, b2_f32, action_dim = params
    B, state_dim = x.shape
    assert w1_bf.shape == (state_dim, HIDDEN)

    tile_b = _choose_tile_b(B, max_tile_b)
    grid = (_cdiv(B, tile_b),)  # ragged last tile handled by Pallas (rows are
                                # independent; OOB tail rows are masked).

    out = pl.pallas_call(
        policy_kernel,
        out_shape=jax.ShapeDtypeStruct((B, OUT_PAD), out_dtype),
        grid=grid,
        in_specs=[
            pl.BlockSpec((tile_b, state_dim), lambda i: (i, 0)),   # x tile
            pl.BlockSpec((state_dim, HIDDEN), lambda i: (0, 0)),   # W1 resident
            pl.BlockSpec((1, HIDDEN), lambda i: (0, 0)),           # b1 resident
            pl.BlockSpec((HIDDEN, OUT_PAD), lambda i: (0, 0)),     # W2 resident
            pl.BlockSpec((1, OUT_PAD), lambda i: (0, 0)),          # b2 resident
        ],
        out_specs=pl.BlockSpec((tile_b, OUT_PAD), lambda i: (i, 0)),
        compiler_params=pltpu.CompilerParams(
            dimension_semantics=("parallel",)),
    )(x, w1_bf, b1_f32, w2_bf, b2_f32)

    return out[:, :action_dim]


def init_params(key, state_dim, action_dim, hidden=HIDDEN):
    # Deterministic init mimicking PyTorch nn.Linear (uniform +/- 1/sqrt(fan_in)).
    k1, k2, k3, k4 = jax.random.split(key, 4)
    bound1 = 1.0 / (state_dim ** 0.5)
    bound2 = 1.0 / (hidden ** 0.5)
    w1 = jax.random.uniform(k1, (state_dim, hidden), jnp.float32, -bound1, bound1)
    b1 = jax.random.uniform(k2, (1, hidden), jnp.float32, -bound1, bound1)
    w2 = jax.random.uniform(k3, (hidden, action_dim), jnp.float32, -bound2, bound2)
    b2 = jax.random.uniform(k4, (1, action_dim), jnp.float32, -bound2, bound2)
    return w1, b1, w2, b2


if __name__ == "__main__":
    key = jax.random.PRNGKey(0)
    batch, state_dim, action_dim = 8, 16, 4

    kx, kp = jax.random.split(key)
    x = jax.random.normal(kx, (batch, state_dim), jnp.float32)
    w1, b1, w2, b2 = init_params(kp, state_dim, action_dim)

    # One-time weight prep (cast / pad / mask) -- not in the per-call path.
    params = prepare_params(w1, b1, w2, b2)

    probs = policy_forward(x, params)
    jax.block_until_ready(probs)
    assert probs.shape == (batch, action_dim)
    assert probs.dtype == jnp.float32

    # Reference mimicking the kernel's bf16-input / f32-accumulate matmuls.
    xb, w1b, w2b = (x.astype(jnp.bfloat16), w1.astype(jnp.bfloat16),
                    w2.astype(jnp.bfloat16))
    h_ref = jnp.maximum(
        jnp.dot(xb, w1b, preferred_element_type=jnp.float32) + b1, 0.0)
    logits_ref = jnp.dot(h_ref.astype(jnp.bfloat16), w2b,
                         preferred_element_type=jnp.float32) + b2
    ref = jax.nn.softmax(logits_ref, axis=-1)
    assert jnp.allclose(probs, ref, atol=2e-3, rtol=2e-3)
    # Exact normalization (fixed: no approx reciprocal any more).
    assert jnp.allclose(jnp.sum(probs, axis=-1), 1.0, atol=1e-4)

    # Looser sanity check against the pure-f32 PyTorch-equivalent math.
    h32 = jnp.maximum(x @ w1 + b1, 0.0)
    ref32 = jax.nn.softmax(h32 @ w2 + b2, axis=-1)
    assert jnp.allclose(probs, ref32, atol=5e-2)

    # Optional reduced-writeback path: bf16 probabilities (halves output HBM
    # bytes); rows sum to 1 only within bf16 rounding.
    probs_bf16 = policy_forward(x, params, out_dtype=jnp.bfloat16)
    jax.block_until_ready(probs_bf16)
    assert probs_bf16.dtype == jnp.bfloat16
    assert jnp.allclose(probs_bf16.astype(jnp.float32), ref, atol=1e-2)
    assert jnp.allclose(jnp.sum(probs_bf16.astype(jnp.float32), axis=-1), 1.0,
                        atol=1e-2)

    print("KERNEL_OK")
</pallas_src>

<mosaic_0001>
module attributes {stable_mosaic.version = 11 : i64} {
  func.func @policy_kernel(%arg0: i32, %arg1: memref<8x16xf32, #tpu.memory_space<vmem>>, %arg2: memref<16x128xbf16, #tpu.memory_space<vmem>>, %arg3: memref<1x128xf32, #tpu.memory_space<vmem>>, %arg4: memref<128x128xbf16, #tpu.memory_space<vmem>>, %arg5: memref<1x128xf32, #tpu.memory_space<vmem>>, %arg6: memref<8x128xf32, #tpu.memory_space<vmem>>) attributes {dimension_semantics = [#tpu.dimension_semantics<parallel>], iteration_bounds = array<i64: 1>, scalar_prefetch = 0 : i64, scratch_operands = 0 : i64, tpu.core_type = #tpu.core_type<tc>, window_params = [{transform_indices = @transform_0, window_bounds = array<i64: 8, 16>}, {pipeline_mode = #tpu.pipeline_mode<synchronous>, transform_indices = @transform_1, window_bounds = array<i64: 16, 128>}, {pipeline_mode = #tpu.pipeline_mode<synchronous>, transform_indices = @transform_2, window_bounds = array<i64: 1, 128>}, {pipeline_mode = #tpu.pipeline_mode<synchronous>, transform_indices = @transform_3, window_bounds = array<i64: 128, 128>}, {pipeline_mode = #tpu.pipeline_mode<synchronous>, transform_indices = @transform_4, window_bounds = array<i64: 1, 128>}, {transform_indices = @transform_5, window_bounds = array<i64: 8, 128>}]} {
    %c0 = arith.constant 0 : index
    %c0_0 = arith.constant 0 : index
    %0 = vector.load %arg1[%c0, %c0_0] : memref<8x16xf32, #tpu.memory_space<vmem>>, vector<8x16xf32>
    %1 = arith.truncf %0 : vector<8x16xf32> to vector<8x16xbf16>
    %c0_1 = arith.constant 0 : index
    %c0_2 = arith.constant 0 : index
    %2 = vector.load %arg2[%c0_1, %c0_2] : memref<16x128xbf16, #tpu.memory_space<vmem>>, vector<16x128xbf16>
    %cst = arith.constant dense<0.000000e+00> : vector<8x128xf32>
    %3 = tpu.matmul %1, %2, %cst {dimension_numbers = #tpu.dot_dimension_numbers<[1], [0], [0], [1], [0, 0, 1, 1], [], []>} : vector<8x16xbf16>, vector<16x128xbf16>, vector<8x128xf32> -> vector<8x128xf32>
    %c0_3 = arith.constant 0 : index
    %c0_4 = arith.constant 0 : index
    %4 = vector.load %arg3[%c0_3, %c0_4] : memref<1x128xf32, #tpu.memory_space<vmem>>, vector<1x128xf32>
    %5 = vector.broadcast %4 : vector<1x128xf32> to vector<8x128xf32>
    %6 = arith.addf %3, %5 : vector<8x128xf32>
    %cst_5 = arith.constant 0.000000e+00 : f32
    %7 = vector.broadcast %cst_5 : f32 to vector<8x128xf32>
    %8 = arith.maximumf %6, %7 : vector<8x128xf32>
    %9 = arith.truncf %8 : vector<8x128xf32> to vector<8x128xbf16>
    %c0_6 = arith.constant 0 : index
    %c0_7 = arith.constant 0 : index
    %10 = vector.load %arg4[%c0_6, %c0_7] : memref<128x128xbf16, #tpu.memory_space<vmem>>, vector<128x128xbf16>
    %cst_8 = arith.constant dense<0.000000e+00> : vector<8x128xf32>
    %11 = tpu.matmul %9, %10, %cst_8 {dimension_numbers = #tpu.dot_dimension_numbers<[1], [0], [0], [1], [0, 0, 1, 1], [], []>} : vector<8x128xbf16>, vector<128x128xbf16>, vector<8x128xf32> -> vector<8x128xf32>
    %c0_9 = arith.constant 0 : index
    %c0_10 = arith.constant 0 : index
    %12 = vector.load %arg5[%c0_9, %c0_10] : memref<1x128xf32, #tpu.memory_space<vmem>>, vector<1x128xf32>
    %13 = vector.broadcast %12 : vector<1x128xf32> to vector<8x128xf32>
    %14 = arith.addf %11, %13 : vector<8x128xf32>
    %cst_11 = arith.constant dense<0xFF800000> : vector<8xf32>
    %15 = vector.multi_reduction <maximumf>, %14, %cst_11 [1] : vector<8x128xf32> to vector<8xf32>
    %16 = vector.shape_cast %15 : vector<8xf32> to vector<8x1xf32>
    %17 = vector.broadcast %16 : vector<8x1xf32> to vector<8x128xf32>
    %18 = arith.subf %14, %17 : vector<8x128xf32>
    %19 = math.exp %18 : vector<8x128xf32>
    %cst_12 = arith.constant dense<0.000000e+00> : vector<8xf32>
    %20 = vector.multi_reduction <add>, %19, %cst_12 [1] : vector<8x128xf32> to vector<8xf32>
    %21 = vector.shape_cast %20 : vector<8xf32> to vector<8x1xf32>
    %22 = vector.broadcast %21 : vector<8x1xf32> to vector<8x128xf32>
    %23 = arith.divf %19, %22 : vector<8x128xf32>
    %c0_13 = arith.constant 0 : index
    %c0_14 = arith.constant 0 : index
    %24 = vector.load %arg6[%c0_13, %c0_14] : memref<8x128xf32, #tpu.memory_space<vmem>>, vector<8x128xf32>
    tpu.vector_store %arg6[%c0_13, %c0_14], %23 {strides = array<i32>} : memref<8x128xf32, #tpu.memory_space<vmem>>, vector<8x128xf32>,
    return
  }
  func.func @transform_0(%arg0: i32) -> (i32, i32) {
    %c0_i32 = arith.constant 0 : i32
    %c0_i32_0 = arith.constant 0 : i32
    return %arg0, %c0_i32 : i32, i32
  }
  func.func @transform_1(%arg0: i32) -> (i32, i32) {
    %c0_i32 = arith.constant 0 : i32
    %c0_i32_0 = arith.constant 0 : i32
    %c0_i32_1 = arith.constant 0 : i32
    return %c0_i32, %c0_i32_0 : i32, i32
  }
  func.func @transform_2(%arg0: i32) -> (i32, i32) {
    %c0_i32 = arith.constant 0 : i32
    %c0_i32_0 = arith.constant 0 : i32
    %c0_i32_1 = arith.constant 0 : i32
    return %c0_i32, %c0_i32_0 : i32, i32
  }
  func.func @transform_3(%arg0: i32) -> (i32, i32) {
    %c0_i32 = arith.constant 0 : i32
    %c0_i32_0 = arith.constant 0 : i32
    %c0_i32_1 = arith.constant 0 : i32
    return %c0_i32, %c0_i32_0 : i32, i32
  }
  func.func @transform_4(%arg0: i32) -> (i32, i32) {
    %c0_i32 = arith.constant 0 : i32
    %c0_i32_0 = arith.constant 0 : i32
    %c0_i32_1 = arith.constant 0 : i32
    return %c0_i32, %c0_i32_0 : i32, i32
  }
  func.func @transform_5(%arg0: i32) -> (i32, i32) {
    %c0_i32 = arith.constant 0 : i32
    %c0_i32_0 = arith.constant 0 : i32
    return %arg0, %c0_i32 : i32, i32
  }
}

</mosaic_0001>

<bundles_post_ra>
// kernel: tpu_custom_call.1
= control target key start
LH: loop header
LB: loop body
LE: loop exit
PB: predicated region body
PF: predicated region fallthrough
CT: control target
= control target key end

     0   :  { %10 = vsyncpa [#allocation3], 0  ;;  %s523_s0 = inlined_call_operand.hbm [shape: f32[8,16], index: 0, kind: input, shape index: {}]   ;;  %s524_s1 = inlined_call_operand.hbm [shape: bf16[16,128], index: 1, kind: input, shape index: {}]   ;;  %s525_s2 = inlined_call_operand.vmem [shape: f32[1,128], index: 2, kind: input, shape index: {}]   ;;  %s526_s3 = inlined_call_operand.hbm [shape: bf16[128,128], index: 3, kind: input, shape index: {}]   ;;  %s527_s4 = inlined_call_operand.vmem [shape: f32[1,128], index: 4, kind: input, shape index: {}]   ;;  %s528_s5 = inlined_call_operand.hbm [shape: f32[8,128], index: 5, kind: output, shape index: {}]  }
   0x1   :  { %11 = vsyncpa [#allocation6], 0 }
   0x2   :  { %12 = vsyncpa [#allocation4], 0  ;;  %s425_s18 = smov [#allocation5]   ;;  %s331_s22 = scalar_lea.hbm %s524_s1, 128 }
   0x3   :  { %s28_s19 = sshll.u32 %s425_s18, 4  ;;  %p332_p0 = scmp.ne.s32.totalorder %s524_s1, %s331_s22  ;;  %s29_s19 = int_to_ptr.vmem [resolvable:$true] %s28_s19 }
   0x4   :  { %p335_p1 = scmp.lt.u32.totalorder %s331_s22, %s524_s1 }
   0x6   :  { %p337_p2 = pnand %p335_p1, %p332_p0 }
   0x8   :  { %340 = shalt.err (!%p337_p2)
}
   0x9   :  { %s341_s27 = scalar_lea.vmem %s29_s19, 128  ;;  %p346_p4 = scmp.lt.s32.totalorder %s29_s19, %s29_s19 }
   0xa   :  { %p342_p3 = scmp.ne.s32.totalorder %s29_s19, %s341_s27  ;;  %p347_p5 = scmp.lt.s32.totalorder %s341_s27, %s341_s27 }
   0xc   :  { %p348_p6 = por %p347_p5, %p346_p4 }
   0xe   :  { %p349_p7 = pnand %p348_p6, %p342_p3 }
  0x10   :  { %352 = shalt.err (!%p349_p7)
}
  0x11   :  { %s426_s28 = smov 64   ;;  %s427_s29 = smov 4  }
  0x12   :  { %34 = dma.hbm_to_vmem [thread:$0]  %s524_s1, 128, %s29_s19, [#allocation6], %s426_s28, %s426_s28, %s427_s29  }
  0x13   :  { %s428_s7 = smov [#allocation2]   ;;  %s429_s9 = smov [#allocation7]  }
  0x14   :  { %s19_s8 = sshll.u32 %s428_s7, 4  ;;  %s42_s10 = sshll.u32 %s429_s9, 4  ;;  %s20_s8 = int_to_ptr.vmem [resolvable:$true] %s19_s8  ;;  %s43_s10 = int_to_ptr.vmem [resolvable:$true] %s42_s10 }
  0x15   :  { %s353_s13 = scalar_lea.hbm %s523_s0, 128 }
  0x16   :  { %p354_p8 = scmp.ne.s32.totalorder %s523_s0, %s353_s13  ;;  %p357_p9 = scmp.lt.u32.totalorder %s353_s13, %s523_s0 }
  0x18   :  { %p359_p10 = pnand %p357_p9, %p354_p8 }
  0x1a   :  { %362 = shalt.err (!%p359_p10)
}
  0x1b   :  { %s363_s1 = scalar_lea.vmem %s20_s8, 128  ;;  %p368_p12 = scmp.lt.s32.totalorder %s20_s8, %s20_s8 }
  0x1c   :  { %p364_p11 = scmp.ne.s32.totalorder %s20_s8, %s363_s1  ;;  %p369_p13 = scmp.lt.s32.totalorder %s363_s1, %s363_s1 }
  0x1e   :  { %p370_p0 = por %p369_p13, %p368_p12 }
  0x20   :  { %p371_p1 = pnand %p370_p0, %p364_p11 }
  0x22   :  { %374 = shalt.err (!%p371_p1)
}
  0x23   :  { %22 = dma.hbm_to_vmem [thread:$0]  %s523_s0, 128, %s20_s8, [#allocation3]  }
  0x24   :  { %s375_s22 = scalar_lea.hbm %s526_s3, 1024 }
  0x25   :  { %p376_p2 = scmp.ne.s32.totalorder %s526_s3, %s375_s22  ;;  %p379_p3 = scmp.lt.u32.totalorder %s375_s22, %s526_s3 }
  0x27   :  { %p381_p4 = pnand %p379_p3, %p376_p2 }
  0x29   :  { %384 = shalt.err (!%p381_p4)
}
  0x2a   :  { %s385_s27 = scalar_lea.vmem %s43_s10, 1024  ;;  %p390_p6 = scmp.lt.s32.totalorder %s43_s10, %s43_s10 }
  0x2b   :  { %p386_p5 = scmp.ne.s32.totalorder %s43_s10, %s385_s27  ;;  %p391_p7 = scmp.lt.s32.totalorder %s385_s27, %s385_s27 }
  0x2d   :  { %p392_p8 = por %p391_p7, %p390_p6 }
  0x2f   :  { %p393_p9 = pnand %p392_p8, %p386_p5 }
  0x31   :  { %396 = shalt.err (!%p393_p9)
}
  0x32   :  { %48 = dma.hbm_to_vmem [thread:$0]  %s526_s3, 1024, %s43_s10, [#allocation6], %s426_s28, %s426_s28, %s427_s29  }
  0x33   :  { %419 = dma.done.wait [#allocation3], 128  }
  0x34   :  { %420 = vsyncadd [#allocation3], 4294967168 }
  0x35   :  { %421 = dma.done.wait [#allocation6], 1152  }
  0x36   :  { %422 = vsyncadd [#allocation6], 4294966144  ;;  %v430_v0 = vmov 0.0   ;;  %vm431_vm0 = vmmov 0   ;;  %v318_v1 = vld [vmem:[#allocation5] sm:$0xff]   ;;  %v61_v2 = vld [vmem:[#allocation2] sm:$0xff] }
  0x37   :  { %284 = vmatprep.subr.bf16.mxu0 %v430_v0  ;;  %286 = vmatprep.mubr.msk.bf16.mxu0 %vm431_vm0, %v430_v0  ;;  %v62_v3 = vpack.c.bf16 %v61_v2, %v61_v2  ;;  %vm78_vm1 = vcmask 130048   ;;  %v319_v4 = vld [vmem:[#allocation7] sm:$0xff]   ;;  %v320_v5 = vld [vmem:[#allocation7 + $0x8] sm:$0xff]   ;;  %v321_v6 = vld [vmem:[#allocation7 + $0x10] sm:$0xff]  }
  0x38   :  { %290 = vmatprep.subr.bf16.mxu1 %v430_v0  ;;  %306 = vmatprep.mubr.msk.bf16.mxu1 %vm431_vm0, %v430_v0  ;;  %v322_v7 = vld [vmem:[#allocation7 + $0x18] sm:$0xff]   ;;  %v323_v8 = vld [vmem:[#allocation7 + $0x20] sm:$0xff]   ;;  %v324_v9 = vld [vmem:[#allocation7 + $0x28] sm:$0xff]  }
  0x39   :  { %285 = vmatpush3.bf16.msra.mxu0 %v318_v1  ;;  %291 = vmatpush3.bf16.msra.mxu1 %v319_v4  ;;  %v325_v10 = vld [vmem:[#allocation7 + $0x30] sm:$0xff]   ;;  %v326_v11 = vld [vmem:[#allocation7 + $0x38] sm:$0xff]  }
  0x3a   :  { %292 = vmatprep.subr.bf16.mxu1 %v430_v0  ;;  %v261_v12 = vld [vmem:[%s525_s2] ss:$0 sm:$0xff]  ;;  %s432_s2 = smov [#allocation8]  }
  0x3b   :  { %v264_v20 = vld [vmem:[%s527_s4] ss:$0 sm:$0xff]  ;;  %s251_s7 = sshll.u32 %s432_s2, 4  ;;  %s252_s7 = int_to_ptr.vmem [resolvable:$true] %s251_s7 }
  0x3c   :  { %287 = vmatmul.mubr.msk.bf16.vlgmr.msra.gmra.mrb[0].mxu0 %vm78_vm1, %v62_v3  ;;  %s397_s4 = scalar_lea.vmem %s252_s7, 128  ;;  %p402_p11 = scmp.lt.s32.totalorder %s252_s7, %s252_s7 }
  0x3d   :  { %293 = vmatpush3.bf16.msra.mxu1 %v320_v5  ;;  %p398_p10 = scmp.ne.s32.totalorder %s252_s7, %s397_s4  ;;  %p403_p12 = scmp.lt.s32.totalorder %s397_s4, %s397_s4 }
  0x3e   :  { %294 = vmatprep.subr.bf16.mxu1 %v430_v0 }
  0x3f   :  { %p404_p13 = por %p403_p12, %p402_p11 }
  0x41   :  { %295 = vmatpush3.bf16.msra.mxu1 %v321_v6  ;;  %p405_p0 = pnand %p404_p13, %p398_p10 }
  0x42   :  { %296 = vmatprep.subr.bf16.mxu1 %v430_v0 }
  0x45   :  { %297 = vmatpush3.bf16.msra.mxu1 %v322_v7 }
  0x46   :  { %298 = vmatprep.subr.bf16.mxu1 %v430_v0 }
  0x49   :  { %299 = vmatpush3.bf16.msra.mxu1 %v323_v8 }
  0x4a   :  { %300 = vmatprep.subr.bf16.mxu1 %v430_v0 }
  0x4d   :  { %301 = vmatpush3.bf16.msra.mxu1 %v324_v9 }
  0x4e   :  { %302 = vmatprep.subr.bf16.mxu1 %v430_v0 }
  0x51   :  { %303 = vmatpush3.bf16.msra.mxu1 %v325_v10 }
  0x52   :  { %304 = vmatprep.subr.bf16.mxu1 %v430_v0 }
  0x55   :  { %305 = vmatpush3.bf16.msra.mxu1 %v326_v11 }
 0x10f   :  { %v116_v13 = vpop.f32.mrb[0].mxu0 }
 0x110   :  { %v117_v14 = vadd.f32 %v261_v12, %v116_v13  ;;  %v288_v15 = vpop.f32.mrb[1].mxu0 }
 0x111   :  { %v119_v16 = vpop.f32.mrb[2].mxu0 }
 0x112   :  { %v122_v17 = vmax.f32 %v117_v14, 0.0  ;;  %v289_v18 = vpop.f32.mrb[3].mxu0 }
 0x114   :  { %v123_v19 = vpack.c.bf16 %v122_v17, %v122_v17 }
 0x116   :  { %307 = vmatmul.mubr.bf16.vlgmr.msra.gmra.mrb[0].mxu1 %v123_v19 }
 0x1e9   :  { %v229_v21 = vpop.f32.mrb[0].mxu1 }
 0x1ea   :  { %v230_v22 = vadd.f32 %v264_v20, %v229_v21  ;;  %v308_v23 = vpop.f32.mrb[1].mxu1 }
 0x1eb   :  { %v232_v24 = vpop.f32.mrb[2].mxu1 }
 0x1ec   :  { %235 = vmax.xlane.f32.xlu0 %v230_v22  ;;  %v309_v25 = vpop.f32.mrb[3].mxu1 }
 0x279   :  { %v236_v26 = vpop.xlane.xlu0 %235 }
 0x27a   :  { %v237_v27 = vsub.f32 %v230_v22, %v236_v26 }
 0x27c   :  { %v238_v28 = vmul.f32 1.442695, %v237_v27 }
 0x27e   :  { %327 = vpow2.f32 %v238_v28 }
 0x288   :  { %v328_v29 = vpop.eup %327 }
 0x289   :  { %240 = vadd.xlane.f32.xlu0 %v328_v29 }
 0x316   :  { %v241_v30 = vpop.xlane.xlu0 %240 }
 0x317   :  { %329 = vrcp.f32 %v241_v30 }
 0x321   :  { %v330_v31 = vpop.eup %329 }
 0x322   :  { %v243_v32 = vmul.f32 %v330_v31, %v328_v29 }
 0x324   :  { %244 = vst [vmem:[#allocation8] sm:$0xff] %v243_v32 }
 0x325   :  { %408 = shalt.err (!%p405_p0)
}
 0x326   :  { %s409_s10 = scalar_lea.hbm %s528_s5, 128 }
 0x327   :  { %p410_p1 = scmp.ne.s32.totalorder %s528_s5, %s409_s10  ;;  %p413_p2 = scmp.lt.u32.totalorder %s409_s10, %s528_s5 }
 0x329   :  { %p415_p3 = pnand %p413_p2, %p410_p1 }
 0x32b   :  { %418 = shalt.err (!%p415_p3)
}
 0x32c   :  { %254 = dma.vmem_to_hbm [thread:$0]  %s252_s7, 128, %s528_s5, [#allocation4]  }
 0x32d   :  { %423 = dma.done.wait [#allocation4], 128  }
 0x32e   :  { %424 = vsyncadd [#allocation4], 4294967168 }
 0x32f   :  { %258 = vsyncpa [#allocation3], 1 }
 0x330   :  { %259 = vsyncpa [#allocation6], 1 }
 0x331   :  { %260 = vsyncpa [#allocation4], 1 }

</bundles_post_ra>
